<compile_context>
chip_gen: v6e
topology: v6e:2x2x1
jax: 0.10.0
libtpu: 0.0.40
codegen_flags: <defaults>
</compile_context>

<pallas_src>
import jax
import jax.numpy as jnp
from jax.experimental import pallas as pl
from jax.experimental.pallas import tpu as pltpu

# Config from the reference module
MESSAGE_INPUT_DIM = 2
MESSAGE_HIDDEN_SIZES = (36, 8, 3)

_LANE = 128
_CHUNK = 512          # lanes processed per inner-loop iteration (keeps h in vregs)


def _round_up(x, m):
    return (x + m - 1) // m * m


def _message_kernel(x_ref,
                    w1_ref, b1_ref,
                    w2_ref, b2_ref,
                    w3_ref, b3_ref,
                    w4_ref, b4_ref,
                    o_ref):
    # x_ref is (2, tile): features on sublanes, batch on the lane axis.
    w1 = w1_ref[...]          # (36, 2)
    b1 = b1_ref[...]          # (36, 1)
    w2 = w2_ref[...]          # (8, 36)
    b2 = b2_ref[...]          # (8, 1)
    w3 = w3_ref[...]          # (3, 8)
    b3 = b3_ref[...]          # (3, 1)
    w4 = w4_ref[...]          # (2, 3)
    b4 = b4_ref[...]          # (2, 1)

    tile = x_ref.shape[1]
    n_chunks = tile // _CHUNK

    # Process the tile in 512-lane chunks so the (36, chunk) / (8, chunk) /
    # (3, chunk) fp32 intermediates stay in vregs (<= ~30 vregs live) instead
    # of materializing (36, tile)-sized buffers in VMEM.
    @pl.loop(0, n_chunks)
    def _(c):
        start = pl.multiple_of(c * _CHUNK, _CHUNK)
        x = x_ref[:, pl.ds(start, _CHUNK)]                      # (2, CHUNK)

        # Layers 1-3 on the MXU (idle otherwise), f32 accumulation.
        h = jnp.dot(w1, x, preferred_element_type=jnp.float32) + b1
        h = jnp.maximum(h, 0.0)                                  # (36, CHUNK)

        h = jnp.dot(w2, h, preferred_element_type=jnp.float32) + b2
        h = jnp.maximum(h, 0.0)                                  # (8, CHUNK)

        h = jnp.dot(w3, h, preferred_element_type=jnp.float32) + b3
        h = jnp.maximum(h, 0.0)                                  # (3, CHUNK)

        # Layer 4 (fan_in = 3, fan_out = 2): VPU broadcast FMAs,
        # skip the MXU round trip for a 2-row result.
        out = (w4[:, 0:1] * h[0:1, :] +
               w4[:, 1:2] * h[1:2, :] +
               w4[:, 2:3] * h[2:3, :] + b4)                      # (2, CHUNK)

        o_ref[:, pl.ds(start, _CHUNK)] = out.astype(o_ref.dtype)


def message_forward_fm(xt, params, *, max_batch_tile=32768):
    """Feature-major entry point: xt is (2, N) float32 -> (2, N) float32.

    No transposes; only the lane (batch) axis tail is padded when N is not a
    multiple of the tile.  Prefer this at the call site for large N.
    """
    d_in, n = xt.shape
    assert d_in == MESSAGE_INPUT_DIM
    d_out = params["w4"].shape[0]

    # 512-aligned (hence 128-aligned) batch tile, capped for huge batches.
    tile = min(int(max_batch_tile), _round_up(n, _CHUNK))
    tile = _round_up(tile, _CHUNK)
    n_pad = _round_up(n, tile)
    if n_pad != n:
        xt = jnp.pad(xt, ((0, 0), (0, n_pad - n)))   # tail-only pad
    grid = (n_pad // tile,)

    def const_spec(arr):
        # Whole (tiny) parameter as one block, same block every grid step.
        return pl.BlockSpec(arr.shape, lambda i: (0, 0))

    out_t = pl.pallas_call(
        _message_kernel,
        out_shape=jax.ShapeDtypeStruct((d_out, n_pad), xt.dtype),
        grid=grid,
        in_specs=[
            pl.BlockSpec((d_in, tile), lambda i: (0, i)),
            const_spec(params["w1"]), const_spec(params["b1"]),
            const_spec(params["w2"]), const_spec(params["b2"]),
            const_spec(params["w3"]), const_spec(params["b3"]),
            const_spec(params["w4"]), const_spec(params["b4"]),
        ],
        out_specs=pl.BlockSpec((d_out, tile), lambda i: (0, i)),
        compiler_params=pltpu.CompilerParams(
            dimension_semantics=("parallel",),
        ),
    )(xt,
      params["w1"], params["b1"],
      params["w2"], params["b2"],
      params["w3"], params["b3"],
      params["w4"], params["b4"])

    return out_t[:, :n]


def message_forward(x, params, **kwargs):
    """PyTorch-layout convenience wrapper: x (N, 2) -> (N, 2).

    Costs one transpose pass each way; callers that can keep activations
    feature-major should use message_forward_fm directly.
    """
    return message_forward_fm(x.T, params, **kwargs).T


def init_params(key):
    """nn.Linear-style init: U(-1/sqrt(fan_in), 1/sqrt(fan_in)).

    Weights in PyTorch (out, in) layout; biases as (out, 1) columns so they
    broadcast over the lane (batch) axis inside the kernel.
    """
    dims = (MESSAGE_INPUT_DIM,) + MESSAGE_HIDDEN_SIZES + (MESSAGE_INPUT_DIM,)
    params = {}
    for idx in range(4):
        fan_in, fan_out = dims[idx], dims[idx + 1]
        key, kw, kb = jax.random.split(key, 3)
        bound = 1.0 / jnp.sqrt(jnp.float32(fan_in))
        params[f"w{idx + 1}"] = jax.random.uniform(
            kw, (fan_out, fan_in), jnp.float32, minval=-bound, maxval=bound)
        params[f"b{idx + 1}"] = jax.random.uniform(
            kb, (fan_out, 1), jnp.float32, minval=-bound, maxval=bound)
    return params


def reference_forward(x, params):
    hp = jax.lax.Precision.HIGHEST
    h = jnp.maximum(jnp.dot(x, params["w1"].T, precision=hp) + params["b1"][:, 0], 0.0)
    h = jnp.maximum(jnp.dot(h, params["w2"].T, precision=hp) + params["b2"][:, 0], 0.0)
    h = jnp.maximum(jnp.dot(h, params["w3"].T, precision=hp) + params["b3"][:, 0], 0.0)
    return jnp.dot(h, params["w4"].T, precision=hp) + params["b4"][:, 0]


if __name__ == "__main__":
    key = jax.random.PRNGKey(0)
    params = init_params(key)

    # 200 messages (deliberately not 128/512-aligned) exercises the tail-pad
    # and un-pad path; input dim = MESSAGE_INPUT_DIM = 2.
    kx = jax.random.fold_in(key, 123)
    x = jax.random.normal(kx, (200, MESSAGE_INPUT_DIM), jnp.float32)

    out = message_forward(x, params)
    out = jax.block_until_ready(out)

    ref = reference_forward(x, params)
    assert out.shape == (200, MESSAGE_INPUT_DIM)
    assert jnp.allclose(out, ref, atol=1e-4, rtol=1e-4), "mismatch vs. JAX reference"

    print("KERNEL_OK")
</pallas_src>

<mosaic_0001>
module attributes {stable_mosaic.version = 11 : i64} {
  func.func @_message_kernel(%arg0: i32, %arg1: memref<2x512xf32, #tpu.memory_space<vmem>>, %arg2: memref<36x2xf32, #tpu.memory_space<vmem>>, %arg3: memref<36x1xf32, #tpu.memory_space<vmem>>, %arg4: memref<8x36xf32, #tpu.memory_space<vmem>>, %arg5: memref<8x1xf32, #tpu.memory_space<vmem>>, %arg6: memref<3x8xf32, #tpu.memory_space<vmem>>, %arg7: memref<3x1xf32, #tpu.memory_space<vmem>>, %arg8: memref<2x3xf32, #tpu.memory_space<vmem>>, %arg9: memref<2x1xf32, #tpu.memory_space<vmem>>, %arg10: memref<2x512xf32, #tpu.memory_space<vmem>>) attributes {dimension_semantics = [#tpu.dimension_semantics<parallel>], iteration_bounds = array<i64: 1>, scalar_prefetch = 0 : i64, scratch_operands = 0 : i64, tpu.core_type = #tpu.core_type<tc>, window_params = [{transform_indices = @transform_0, window_bounds = array<i64: 2, 512>}, {pipeline_mode = #tpu.pipeline_mode<synchronous>, transform_indices = @transform_1, window_bounds = array<i64: 36, 2>}, {pipeline_mode = #tpu.pipeline_mode<synchronous>, transform_indices = @transform_2, window_bounds = array<i64: 36, 1>}, {pipeline_mode = #tpu.pipeline_mode<synchronous>, transform_indices = @transform_3, window_bounds = array<i64: 8, 36>}, {pipeline_mode = #tpu.pipeline_mode<synchronous>, transform_indices = @transform_4, window_bounds = array<i64: 8, 1>}, {pipeline_mode = #tpu.pipeline_mode<synchronous>, transform_indices = @transform_5, window_bounds = array<i64: 3, 8>}, {pipeline_mode = #tpu.pipeline_mode<synchronous>, transform_indices = @transform_6, window_bounds = array<i64: 3, 1>}, {pipeline_mode = #tpu.pipeline_mode<synchronous>, transform_indices = @transform_7, window_bounds = array<i64: 2, 3>}, {pipeline_mode = #tpu.pipeline_mode<synchronous>, transform_indices = @transform_8, window_bounds = array<i64: 2, 1>}, {transform_indices = @transform_9, window_bounds = array<i64: 2, 512>}]} {
    %c0 = arith.constant 0 : index
    %c0_0 = arith.constant 0 : index
    %0 = vector.load %arg2[%c0, %c0_0] : memref<36x2xf32, #tpu.memory_space<vmem>>, vector<36x2xf32>
    %c0_1 = arith.constant 0 : index
    %c0_2 = arith.constant 0 : index
    %1 = vector.load %arg3[%c0_1, %c0_2] : memref<36x1xf32, #tpu.memory_space<vmem>>, vector<36x1xf32>
    %c0_3 = arith.constant 0 : index
    %c0_4 = arith.constant 0 : index
    %2 = vector.load %arg4[%c0_3, %c0_4] : memref<8x36xf32, #tpu.memory_space<vmem>>, vector<8x36xf32>
    %c0_5 = arith.constant 0 : index
    %c0_6 = arith.constant 0 : index
    %3 = vector.load %arg5[%c0_5, %c0_6] : memref<8x1xf32, #tpu.memory_space<vmem>>, vector<8x1xf32>
    %c0_7 = arith.constant 0 : index
    %c0_8 = arith.constant 0 : index
    %4 = vector.load %arg6[%c0_7, %c0_8] : memref<3x8xf32, #tpu.memory_space<vmem>>, vector<3x8xf32>
    %c0_9 = arith.constant 0 : index
    %c0_10 = arith.constant 0 : index
    %5 = vector.load %arg7[%c0_9, %c0_10] : memref<3x1xf32, #tpu.memory_space<vmem>>, vector<3x1xf32>
    %c0_11 = arith.constant 0 : index
    %c0_12 = arith.constant 0 : index
    %6 = vector.load %arg8[%c0_11, %c0_12] : memref<2x3xf32, #tpu.memory_space<vmem>>, vector<2x3xf32>
    %c0_13 = arith.constant 0 : index
    %c0_14 = arith.constant 0 : index
    %7 = vector.load %arg9[%c0_13, %c0_14] : memref<2x1xf32, #tpu.memory_space<vmem>>, vector<2x1xf32>
    %c0_i32 = arith.constant 0 : i32
    %c1_i32 = arith.constant 1 : i32
    %8 = arith.muli %c0_i32, %c1_i32 : i32
    %c0_i32_15 = arith.constant 0 : i32
    %9 = arith.addi %c0_i32_15, %8 : i32
    %c512_i32 = arith.constant 512 : i32
    %10 = arith.muli %9, %c512_i32 : i32
    %11 = tpu.assume_multiple %10, 512 : i32
    %c0_16 = arith.constant 0 : index
    %12 = arith.index_cast %11 : i32 to index
    %13 = vector.load %arg1[%c0_16, %12] : memref<2x512xf32, #tpu.memory_space<vmem>>, vector<2x512xf32>
    %cst = arith.constant dense<0.000000e+00> : vector<36x512xf32>
    %14 = tpu.matmul %0, %13, %cst {dimension_numbers = #tpu.dot_dimension_numbers<[1], [0], [0], [1], [0, 0, 1, 1], [], []>} : vector<36x2xf32>, vector<2x512xf32>, vector<36x512xf32> -> vector<36x512xf32>
    %15 = vector.broadcast %1 : vector<36x1xf32> to vector<36x512xf32>
    %16 = arith.addf %14, %15 : vector<36x512xf32>
    %cst_17 = arith.constant 0.000000e+00 : f32
    %17 = vector.broadcast %cst_17 : f32 to vector<36x512xf32>
    %18 = arith.maximumf %16, %17 : vector<36x512xf32>
    %cst_18 = arith.constant dense<0.000000e+00> : vector<8x512xf32>
    %19 = tpu.matmul %2, %18, %cst_18 {dimension_numbers = #tpu.dot_dimension_numbers<[1], [0], [0], [1], [0, 0, 1, 1], [], []>} : vector<8x36xf32>, vector<36x512xf32>, vector<8x512xf32> -> vector<8x512xf32>
    %20 = vector.broadcast %3 : vector<8x1xf32> to vector<8x512xf32>
    %21 = arith.addf %19, %20 : vector<8x512xf32>
    %cst_19 = arith.constant 0.000000e+00 : f32
    %22 = vector.broadcast %cst_19 : f32 to vector<8x512xf32>
    %23 = arith.maximumf %21, %22 : vector<8x512xf32>
    %cst_20 = arith.constant dense<0.000000e+00> : vector<3x512xf32>
    %24 = tpu.matmul %4, %23, %cst_20 {dimension_numbers = #tpu.dot_dimension_numbers<[1], [0], [0], [1], [0, 0, 1, 1], [], []>} : vector<3x8xf32>, vector<8x512xf32>, vector<3x512xf32> -> vector<3x512xf32>
    %25 = vector.broadcast %5 : vector<3x1xf32> to vector<3x512xf32>
    %26 = arith.addf %24, %25 : vector<3x512xf32>
    %cst_21 = arith.constant 0.000000e+00 : f32
    %27 = vector.broadcast %cst_21 : f32 to vector<3x512xf32>
    %28 = arith.maximumf %26, %27 : vector<3x512xf32>
    %29 = vector.extract_strided_slice %6 {offsets = [0, 0], sizes = [2, 1], strides = [1, 1]} : vector<2x3xf32> to vector<2x1xf32>
    %30 = vector.extract_strided_slice %28 {offsets = [0, 0], sizes = [1, 512], strides = [1, 1]} : vector<3x512xf32> to vector<1x512xf32>
    %31 = vector.broadcast %29 : vector<2x1xf32> to vector<2x512xf32>
    %32 = vector.broadcast %30 : vector<1x512xf32> to vector<2x512xf32>
    %33 = arith.mulf %31, %32 : vector<2x512xf32>
    %34 = vector.extract_strided_slice %6 {offsets = [0, 1], sizes = [2, 1], strides = [1, 1]} : vector<2x3xf32> to vector<2x1xf32>
    %35 = vector.extract_strided_slice %28 {offsets = [1, 0], sizes = [1, 512], strides = [1, 1]} : vector<3x512xf32> to vector<1x512xf32>
    %36 = vector.broadcast %34 : vector<2x1xf32> to vector<2x512xf32>
    %37 = vector.broadcast %35 : vector<1x512xf32> to vector<2x512xf32>
    %38 = arith.mulf %36, %37 : vector<2x512xf32>
    %39 = arith.addf %33, %38 : vector<2x512xf32>
    %40 = vector.extract_strided_slice %6 {offsets = [0, 2], sizes = [2, 1], strides = [1, 1]} : vector<2x3xf32> to vector<2x1xf32>
    %41 = vector.extract_strided_slice %28 {offsets = [2, 0], sizes = [1, 512], strides = [1, 1]} : vector<3x512xf32> to vector<1x512xf32>
    %42 = vector.broadcast %40 : vector<2x1xf32> to vector<2x512xf32>
    %43 = vector.broadcast %41 : vector<1x512xf32> to vector<2x512xf32>
    %44 = arith.mulf %42, %43 : vector<2x512xf32>
    %45 = arith.addf %39, %44 : vector<2x512xf32>
    %46 = vector.broadcast %7 : vector<2x1xf32> to vector<2x512xf32>
    %47 = arith.addf %45, %46 : vector<2x512xf32>
    %c0_22 = arith.constant 0 : index
    %48 = arith.index_cast %11 : i32 to index
    %49 = vector.load %arg10[%c0_22, %48] : memref<2x512xf32, #tpu.memory_space<vmem>>, vector<2x512xf32>
    tpu.vector_store %arg10[%c0_22, %48], %47 {strides = array<i32>} : memref<2x512xf32, #tpu.memory_space<vmem>>, vector<2x512xf32>,
    %c1_i32_23 = arith.constant 1 : i32
    return
  }
  func.func @transform_0(%arg0: i32) -> (i32, i32) {
    %c0_i32 = arith.constant 0 : i32
    %c0_i32_0 = arith.constant 0 : i32
    return %c0_i32, %arg0 : i32, i32
  }
  func.func @transform_1(%arg0: i32) -> (i32, i32) {
    %c0_i32 = arith.constant 0 : i32
    %c0_i32_0 = arith.constant 0 : i32
    %c0_i32_1 = arith.constant 0 : i32
    return %c0_i32, %c0_i32_0 : i32, i32
  }
  func.func @transform_2(%arg0: i32) -> (i32, i32) {
    %c0_i32 = arith.constant 0 : i32
    %c0_i32_0 = arith.constant 0 : i32
    %c0_i32_1 = arith.constant 0 : i32
    return %c0_i32, %c0_i32_0 : i32, i32
  }
  func.func @transform_3(%arg0: i32) -> (i32, i32) {
    %c0_i32 = arith.constant 0 : i32
    %c0_i32_0 = arith.constant 0 : i32
    %c0_i32_1 = arith.constant 0 : i32
    return %c0_i32, %c0_i32_0 : i32, i32
  }
  func.func @transform_4(%arg0: i32) -> (i32, i32) {
    %c0_i32 = arith.constant 0 : i32
    %c0_i32_0 = arith.constant 0 : i32
    %c0_i32_1 = arith.constant 0 : i32
    return %c0_i32, %c0_i32_0 : i32, i32
  }
  func.func @transform_5(%arg0: i32) -> (i32, i32) {
    %c0_i32 = arith.constant 0 : i32
    %c0_i32_0 = arith.constant 0 : i32
    %c0_i32_1 = arith.constant 0 : i32
    return %c0_i32, %c0_i32_0 : i32, i32
  }
  func.func @transform_6(%arg0: i32) -> (i32, i32) {
    %c0_i32 = arith.constant 0 : i32
    %c0_i32_0 = arith.constant 0 : i32
    %c0_i32_1 = arith.constant 0 : i32
    return %c0_i32, %c0_i32_0 : i32, i32
  }
  func.func @transform_7(%arg0: i32) -> (i32, i32) {
    %c0_i32 = arith.constant 0 : i32
    %c0_i32_0 = arith.constant 0 : i32
    %c0_i32_1 = arith.constant 0 : i32
    return %c0_i32, %c0_i32_0 : i32, i32
  }
  func.func @transform_8(%arg0: i32) -> (i32, i32) {
    %c0_i32 = arith.constant 0 : i32
    %c0_i32_0 = arith.constant 0 : i32
    %c0_i32_1 = arith.constant 0 : i32
    return %c0_i32, %c0_i32_0 : i32, i32
  }
  func.func @transform_9(%arg0: i32) -> (i32, i32) {
    %c0_i32 = arith.constant 0 : i32
    %c0_i32_0 = arith.constant 0 : i32
    return %c0_i32, %arg0 : i32, i32
  }
}

</mosaic_0001>

<bundles_post_ra>
// kernel: tpu_custom_call.1
= control target key start
LH: loop header
LB: loop body
LE: loop exit
PB: predicated region body
PF: predicated region fallthrough
CT: control target
= control target key end

     0   :  { %v80_v1 = vlaneseq  ;;  %v835_v2 = vmov 1983009808   ;;  %v836_v4 = vmov 0.0   ;;  %v837_v6 = vmov 0   ;;  %s994_s0 = inlined_call_operand.vmem [shape: f32[2,512], index: 0, kind: input, shape index: {}]   ;;  %s995_s1 = inlined_call_operand.vmem [shape: f32[36,2], index: 1, kind: input, shape index: {}]   ;;  %s996_s2 = inlined_call_operand.vmem [shape: f32[36,1], index: 2, kind: input, shape index: {}]   ;;  %s997_s3 = inlined_call_operand.vmem [shape: f32[8,36], index: 3, kind: input, shape index: {}]   ;;  %s998_s4 = inlined_call_operand.vmem [shape: f32[8,1], index: 4, kind: input, shape index: {}]   ;;  %s999_s5 = inlined_call_operand.vmem [shape: f32[3,8], index: 5, kind: input, shape index: {}]   ;;  %s1000_s6 = inlined_call_operand.vmem [shape: f32[3,1], index: 6, kind: input, shape index: {}]   ;;  %s1001_s7 = inlined_call_operand.vmem [shape: f32[2,3], index: 7, kind: input, shape index: {}]   ;;  %s1002_s8 = inlined_call_operand.vmem [shape: f32[2,1], index: 8, kind: input, shape index: {}]   ;;  %s1003_s9 = inlined_call_operand.hbm [shape: f32[2,512], index: 9, kind: output, shape index: {}]  }
   0x1   :  { %v49_v0 = vld [vmem:[%s994_s0] sm:$0xff]  ;;  %v78_v3 = vunpack.c.l.s4 %v835_v2  ;;  %182 = vmatprep.mubr.f32.mxu0 %v836_v4  ;;  %277 = vmatprep.mubr.f32.mxu1 %v836_v4  ;;  %v40_v10 = vld [vmem:[%s996_s2 + $0x10] sm:$0xff]  ;;  %v41_v11 = vld [vmem:[%s996_s2 + $0x18] sm:$0xff] }
   0x2   :  { %v896_v5 = vshrl.u32 %v80_v1, 7  ;;  %806 = vset.pattern.permute.xlu0 %v837_v6  ;;  %v42_v7 = vld [vmem:[%s996_s2 + $0x20] sm:$0xf]  ;;  %807 = vset.pattern.permute.xlu1 %v837_v6  ;;  %v76_v9 = vcombine.high %v49_v0, %v49_v0  ;;  %v39_v13 = vld [vmem:[%s996_s2 + $0x8] sm:$0xff] }
   0x3   :  { %v79_v8 = vunpack.c.0.s8 %v78_v3  ;;  %72 = vperm.xlu0 %806, %v42_v7   ;;  %62 = vperm.xlu1 %807, %v40_v10  }
   0x5   :  { %v910_v12 = vsub.s32 %v79_v8, %v896_v5 }
   0x6   :  { %14 = vsyncpa [#allocation3], 0  ;;  %vm109_vm0 = vcmask 1041408   ;;  %v33_v18 = vld [vmem:[%s995_s1] sm:$0xff]  ;;  %vm93_vm1 = vcmask 15360   ;;  %v34_v21 = vld [vmem:[%s995_s1 + $0x8] sm:$0xff] }
   0x7   :  { %v83_v14 = vrot.slane %v49_v0, %v910_v12  ;;  %v90_v15 = vrot.slane %v76_v9, %v910_v12  ;;  %67 = vperm.xlu0 %806, %v41_v11   ;;  %57 = vperm.xlu1 %807, %v39_v13   ;;  %v38_v19 = vld [vmem:[%s996_s2] sm:$0xff]  ;;  %v35_v24 = vld [vmem:[%s995_s1 + $0x10] sm:$0xff]  ;;  %v36_v25 = vld [vmem:[%s995_s1 + $0x18] sm:$0xff]  ;;  %vm337_vm2 = vcmask 1043456   ;;  %vm333_vm3 = vcmask 293888  }
   0x8   :  { %v44_v20 = vld [vmem:[%s998_s4] sm:$0xff]  ;;  %vm501_vm4 = vcmask 64512  }
   0x9   :  { %v91_v16 = vcombine.high %v83_v14, %v83_v14  ;;  %v92_v17 = vcombine.high %v90_v15, %v90_v15  ;;  %v46_v22 = vld [vmem:[%s1000_s6] sm:$0x7] }
   0xa   :  { %v939_v23 = vld [vmem:[%s1001_s7] sm:$0x3] }
   0xb   :  { %778 = vmatprep.subr.msk.mxu0 %vm109_vm0, %v91_v16  ;;  %785 = vmatprep.subr.msk.mxu1 %vm109_vm0, %v92_v17  ;;  %v37_v26 = vld [vmem:[%s995_s1 + $0x20] sm:$0xf] }
   0xc   :  { %779 = vmatpush1.msk.msra.mxu0 %vm109_vm0, %v83_v14  ;;  %786 = vmatpush1.msk.msra.mxu1 %vm109_vm0, %v90_v15 }
   0xd   :  { %780 = vmatmul.mubr.msk.f32.vlgmr.msra.gmra.mxu0 %vm93_vm1, %v33_v18  ;;  %787 = vmatmul.mubr.msk.f32.vlgmr.msra.gmra.mxu1 %vm93_vm1, %v33_v18 }
   0xe   :  { %188 = vmatprep.mubr.f32.mxu0 %v836_v4  ;;  %283 = vmatprep.mubr.f32.mxu1 %v836_v4 }
   0xf   :  { %52 = vperm.xlu0 %806, %v38_v19   ;;  %330 = vperm.xlu1 %807, %v44_v20  }
  0x11   :  { %781 = vmatmul.mubr.msk.f32.gmra.mxu0 %vm93_vm1, %v34_v21  ;;  %788 = vmatmul.mubr.msk.f32.gmra.mxu1 %vm93_vm1, %v34_v21 }
  0x12   :  { %194 = vmatprep.mubr.f32.mxu0 %v836_v4  ;;  %289 = vmatprep.mubr.f32.mxu1 %v836_v4 }
  0x13   :  { %498 = vperm.xlu0 %806, %v46_v22   ;;  %653 = vperm.xlu1 %807, %v939_v23  }
  0x15   :  { %782 = vmatmul.mubr.msk.f32.gmra.mxu0 %vm93_vm1, %v35_v24  ;;  %789 = vmatmul.mubr.msk.f32.gmra.mxu1 %vm93_vm1, %v35_v24 }
  0x16   :  { %200 = vmatprep.mubr.f32.mxu0 %v836_v4  ;;  %295 = vmatprep.mubr.f32.mxu1 %v836_v4 }
  0x19   :  { %783 = vmatmul.mubr.msk.f32.gmra.mxu0 %vm93_vm1, %v36_v25  ;;  %790 = vmatmul.mubr.msk.f32.gmra.mxu1 %vm93_vm1, %v36_v25 }
  0x1a   :  { %206 = vmatprep.mubr.f32.mxu0 %v836_v4  ;;  %301 = vmatprep.mubr.f32.mxu1 %v836_v4 }
  0x1d   :  { %784 = vmatmul.mubr.msk.f32.gmra.mxu0 %vm93_vm1, %v37_v26  ;;  %791 = vmatmul.mubr.msk.f32.gmra.mxu1 %vm93_vm1, %v37_v26 }
  0x1e   :  { %414 = vmatprep.mubr.f32.mxu0 %v836_v4  ;;  %485 = vmatprep.mubr.f32.mxu1 %v836_v4 }
  0x7e   :  { %v73_v39 = vpop.permute.xlu0 %72  ;;  %v63_v44 = vpop.permute.xlu1 %62 }
  0x82   :  { %v68_v47 = vpop.permute.xlu0 %67  ;;  %v58_v58 = vpop.permute.xlu1 %57 }
  0x8a   :  { %v53_v3 = vpop.permute.xlu0 %52 }
  0xcd   :  { %v184_v27 = vpop.f32.mrf.mxu0  ;;  %v279_v28 = vpop.f32.mrf.mxu1 }
  0xce   :  { %v185_v20 = vadd.f32 %v184_v27, %v53_v3  ;;  %v280_v21 = vadd.f32 %v279_v28, %v53_v3  ;;  %v43_v27 = vld [vmem:[%s997_s3] sm:$0xff]  ;;  %v838_v28 = vmov 2  }
  0xcf   :  { %v186_v29 = vpop.f32.mrf.mxu0  ;;  %v281_v30 = vpop.f32.mrf.mxu1  ;;  %809 = vset.pattern.permute.xlu1 %v838_v28 }
  0xd0   :  { %v187_v16 = vadd.f32 %v186_v29, %v53_v3  ;;  %v282_v17 = vadd.f32 %v281_v30, %v53_v3  ;;  %705 = vperm.xlu1 %809, %v939_v23  }
  0xd1   :  { %v190_v31 = vpop.f32.mrf.mxu0  ;;  %v285_v32 = vpop.f32.mrf.mxu1 }
  0xd2   :  { %v191_v11 = vadd.f32 %v190_v31, %v58_v58  ;;  %v286_v13 = vadd.f32 %v285_v32, %v58_v58  ;;  %v309_v29 = vmax.f32 %v187_v16, 0.0  ;;  %v311_v30 = vmax.f32 %v282_v17, 0.0 }
  0xd3   :  { %v192_v33 = vpop.f32.mrf.mxu0  ;;  %v287_v34 = vpop.f32.mrf.mxu1 }
  0xd4   :  { %v193_v7 = vadd.f32 %v192_v33, %v58_v58  ;;  %v288_v8 = vadd.f32 %v287_v34, %v58_v58  ;;  %v312_v31 = vmax.f32 %v191_v11, 0.0  ;;  %v314_v32 = vmax.f32 %v286_v13, 0.0  ;;  %810 = vset.pattern.permute.xlu1 %v837_v6 }
  0xd5   :  { %v196_v35 = vpop.f32.mrf.mxu0  ;;  %v291_v36 = vpop.f32.mrf.mxu1  ;;  %v308_v33 = vmax.f32 %v185_v20, 0.0  ;;  %v310_v34 = vmax.f32 %v280_v21, 0.0 }
  0xd6   :  { %v197_v63 = vadd.f32 %v196_v35, %v63_v44  ;;  %v292_v0 = vadd.f32 %v291_v36, %v63_v44  ;;  %v313_v25 = vmax.f32 %v193_v7, 0.0  ;;  %v315_v26 = vmax.f32 %v288_v8, 0.0  ;;  %v48_v36 = vld [vmem:[%s1002_s8] sm:$0x3] }
  0xd7   :  { %v198_v37 = vpop.f32.mrf.mxu0  ;;  %v293_v38 = vpop.f32.mrf.mxu1  ;;  %v839_v35 = vmov 1   ;;  %734 = vperm.xlu1 %810, %v48_v36  }
  0xd8   :  { %v199_v59 = vadd.f32 %v198_v37, %v63_v44  ;;  %v294_v60 = vadd.f32 %v293_v38, %v63_v44  ;;  %v316_v22 = vmax.f32 %v197_v63, 0.0  ;;  %v318_v24 = vmax.f32 %v292_v0, 0.0  ;;  %808 = vset.pattern.permute.xlu0 %v839_v35 }
  0xd9   :  { %v202_v40 = vpop.f32.mrf.mxu0  ;;  %v297_v41 = vpop.f32.mrf.mxu1  ;;  %677 = vperm.xlu0 %808, %v939_v23  }
  0xda   :  { %v203_v56 = vadd.f32 %v202_v40, %v68_v47  ;;  %v298_v57 = vadd.f32 %v297_v41, %v68_v47  ;;  %v317_v18 = vmax.f32 %v199_v59, 0.0  ;;  %v319_v19 = vmax.f32 %v294_v60, 0.0 }
  0xdb   :  { %v204_v42 = vpop.f32.mrf.mxu0  ;;  %v299_v43 = vpop.f32.mrf.mxu1 }
  0xdc   :  { %v205_v52 = vadd.f32 %v204_v42, %v68_v47  ;;  %v300_v53 = vadd.f32 %v299_v43, %v68_v47  ;;  %v320_v14 = vmax.f32 %v203_v56, 0.0  ;;  %v322_v15 = vmax.f32 %v298_v57, 0.0 }
  0xdd   :  { %v208_v45 = vpop.f32.mrf.mxu0  ;;  %v303_v46 = vpop.f32.mrf.mxu1  ;;  %811 = vset.pattern.permute.xlu0 %v837_v6  ;;  %v682_v57 = vsub.s32 1, %v896_v5 }
  0xde   :  { %v209_v48 = vadd.f32 %v208_v45, %v73_v39  ;;  %v304_v49 = vadd.f32 %v303_v46, %v73_v39  ;;  %v321_v9 = vmax.f32 %v205_v52, 0.0  ;;  %v323_v10 = vmax.f32 %v300_v53, 0.0  ;;  %v499_v6 = vpop.permute.xlu0 %498 }
  0xdf   :  { %v210_v50 = vpop.f32.mrf.mxu0  ;;  %v305_v51 = vpop.f32.mrf.mxu1  ;;  %v658_v52 = vsub.s32 0, %v896_v5  ;;  %v710_v53 = vsub.s32 2, %v896_v5 }
  0xe0   :  { %v211_v54 = vadd.f32 %v210_v50, %v73_v39  ;;  %v306_v55 = vadd.f32 %v305_v51, %v73_v39  ;;  %v324_v1 = vmax.f32 %v209_v48, 0.0  ;;  %v326_v2 = vmax.f32 %v304_v49, 0.0  ;;  %v45_v48 = vld [vmem:[%s999_s5] sm:$0x7]  ;;  %s840_s5 = smov [#allocation2]  }
  0xe1   :  { %s770_s13 = sshll.u32 %s840_s5, 4  ;;  %s771_s13 = int_to_ptr.vmem [resolvable:$true] %s770_s13 }
  0xe2   :  { %v325_v61 = vmax.f32 %v211_v54, 0.0  ;;  %v327_v62 = vmax.f32 %v306_v55, 0.0  ;;  %s813_s14 = scalar_lea.vmem %s771_s13, 128  ;;  %p818_p1 = scmp.lt.s32.totalorder %s771_s13, %s771_s13 }
  0xe3   :  { %p814_p0 = scmp.ne.s32.totalorder %s771_s13, %s813_s14  ;;  %p819_p2 = scmp.lt.s32.totalorder %s813_s14, %s813_s14 }
  0xe4   :  { %792 = vmatprep.subr.msk.mxu0 %vm337_vm2, %v325_v61  ;;  %795 = vmatprep.subr.msk.mxu1 %vm337_vm2, %v327_v62 }
  0xe5   :  { %793 = vmatpush1.msk.msra.mxu0 %vm337_vm2, %v324_v1  ;;  %796 = vmatpush1.msk.msra.mxu1 %vm337_vm2, %v326_v2  ;;  %p820_p3 = por %p819_p2, %p818_p1 }
  0xe6   :  { %374 = vmatprep.subr.mxu0 %v321_v9  ;;  %445 = vmatprep.subr.mxu1 %v323_v10 }
  0xe7   :  { %375 = vmatpush1.msra.mxu0 %v320_v14  ;;  %446 = vmatpush1.msra.mxu1 %v322_v15  ;;  %p821_p4 = pnand %p820_p3, %p814_p0 }
  0xe8   :  { %376 = vmatprep.subr.mxu0 %v317_v18  ;;  %447 = vmatprep.subr.mxu1 %v319_v19 }
  0xe9   :  { %377 = vmatpush1.msra.mxu0 %v316_v22  ;;  %448 = vmatpush1.msra.mxu1 %v318_v24 }
  0xea   :  { %378 = vmatprep.subr.mxu0 %v313_v25  ;;  %449 = vmatprep.subr.mxu1 %v315_v26 }
  0xeb   :  { %379 = vmatpush1.msra.mxu0 %v312_v31  ;;  %450 = vmatpush1.msra.mxu1 %v314_v32 }
  0xec   :  { %380 = vmatprep.subr.mxu0 %v309_v29  ;;  %451 = vmatprep.subr.mxu1 %v311_v30 }
  0xed   :  { %381 = vmatpush1.msra.mxu0 %v308_v33  ;;  %452 = vmatpush1.msra.mxu1 %v310_v34 }
  0xee   :  { %794 = vmatmul.mubr.msk.f32.vlgmr.msra.gmra.mxu0 %vm333_vm3, %v43_v27  ;;  %797 = vmatmul.mubr.msk.f32.vlgmr.msra.gmra.mxu1 %vm333_vm3, %v43_v27 }
  0xef   :  { %569 = vmatprep.mubr.f32.mxu0 %v836_v4  ;;  %640 = vmatprep.mubr.f32.mxu1 %v836_v4  ;;  %v331_v4 = vpop.permute.xlu1 %330 }
  0xf3   :  { %v654_v58 = vpop.permute.xlu1 %653 }
 0x14b   :  { %v706_v11 = vpop.permute.xlu1 %705 }
 0x154   :  { %v678_v8 = vpop.permute.xlu0 %677 }
 0x1ae   :  { %v416_v37 = vpop.f32.mrf.mxu0  ;;  %v487_v38 = vpop.f32.mrf.mxu1 }
 0x1af   :  { %v417_v39 = vadd.f32 %v416_v37, %v331_v4  ;;  %v488_v40 = vadd.f32 %v487_v38, %v331_v4  ;;  %v735_v37 = vpop.permute.xlu1 %734 }
 0x1b0   :  { %v418_v41 = vpop.f32.mrf.mxu0  ;;  %v489_v42 = vpop.f32.mrf.mxu1 }
 0x1b1   :  { %v419_v43 = vadd.f32 %v418_v41, %v331_v4  ;;  %v490_v44 = vadd.f32 %v489_v42, %v331_v4  ;;  %v492_v46 = vmax.f32 %v417_v39, 0.0  ;;  %v494_v47 = vmax.f32 %v488_v40, 0.0 }
 0x1b3   :  { %v493_v45 = vmax.f32 %v419_v43, 0.0  ;;  %v495_v23 = vmax.f32 %v490_v44, 0.0 }
 0x1b5   :  { %535 = vmatprep.subr.mxu0 %v493_v45  ;;  %606 = vmatprep.subr.mxu1 %v495_v23 }
 0x1b6   :  { %536 = vmatpush1.msra.mxu0 %v492_v46  ;;  %607 = vmatpush1.msra.mxu1 %v494_v47 }
 0x1b7   :  { %798 = vmatmul.mubr.msk.f32.vlgmr.msra.gmra.mxu0 %vm501_vm4, %v45_v48  ;;  %799 = vmatmul.mubr.msk.f32.vlgmr.msra.gmra.mxu1 %vm501_vm4, %v45_v48 }
 0x277   :  { %v571_v49 = vpop.f32.mrf.mxu0  ;;  %v642_v50 = vpop.f32.mrf.mxu1 }
 0x278   :  { %v572_v51 = vadd.f32 %v571_v49, %v499_v6  ;;  %v643_v54 = vadd.f32 %v642_v50, %v499_v6 }
 0x279   :  { %v573_v55 = vpop.f32.mrf.mxu0  ;;  %v644_v56 = vpop.f32.mrf.mxu1 }
 0x27a   :  { %v647_v59 = vmax.f32 %v572_v51, 0.0  ;;  %v649_v60 = vmax.f32 %v643_v54, 0.0  ;;  %v574_v61 = vadd.f32 %v573_v55, %v499_v6  ;;  %v645_v62 = vadd.f32 %v644_v56, %v499_v6 }
 0x27c   :  { %v659_v63 = vrot.slane %v647_v59, %v658_v52  ;;  %v711_v0 = vrot.slane %v647_v59, %v710_v53  ;;  %v667_v1 = vrot.slane %v649_v60, %v658_v52  ;;  %v719_v2 = vrot.slane %v649_v60, %v710_v53 }
 0x27d   :  { %v648_v3 = vmax.f32 %v574_v61, 0.0  ;;  %v650_v7 = vmax.f32 %v645_v62, 0.0  ;;  %v683_v9 = vrot.slane %v647_v59, %v682_v57  ;;  %v691_v10 = vrot.slane %v649_v60, %v682_v57 }
 0x27e   :  { %v672_v13 = vmul.f32 %v659_v63, %v654_v58  ;;  %v674_v14 = vmul.f32 %v667_v1, %v654_v58  ;;  %v724_v22 = vmul.f32 %v711_v0, %v706_v11  ;;  %v726_v24 = vmul.f32 %v719_v2, %v706_v11 }
 0x27f   :  { %v663_v15 = vrot.slane %v648_v3, %v658_v52  ;;  %v715_v16 = vrot.slane %v648_v3, %v710_v53  ;;  %v671_v5 = vrot.slane %v650_v7, %v658_v52  ;;  %v723_v17 = vrot.slane %v650_v7, %v710_v53 }
 0x280   :  { %v687_v18 = vrot.slane %v648_v3, %v682_v57  ;;  %v695_v19 = vrot.slane %v650_v7, %v682_v57  ;;  %v696_v20 = vmul.f32 %v683_v9, %v678_v8  ;;  %v698_v21 = vmul.f32 %v691_v10, %v678_v8 }
 0x281   :  { %v673_v25 = vmul.f32 %v663_v15, %v654_v58  ;;  %v675_v26 = vmul.f32 %v671_v5, %v654_v58  ;;  %v725_v33 = vmul.f32 %v715_v16, %v706_v11  ;;  %v727_v34 = vmul.f32 %v723_v17, %v706_v11 }
 0x282   :  { %v697_v31 = vmul.f32 %v687_v18, %v678_v8  ;;  %v699_v32 = vmul.f32 %v695_v19, %v678_v8  ;;  %v700_v29 = vadd.f32 %v696_v20, %v672_v13  ;;  %v702_v30 = vadd.f32 %v698_v21, %v674_v14 }
 0x284   :  { %v701_v27 = vadd.f32 %v697_v31, %v673_v25  ;;  %v703_v28 = vadd.f32 %v699_v32, %v675_v26  ;;  %v728_v35 = vadd.f32 %v724_v22, %v700_v29  ;;  %v730_v36 = vadd.f32 %v726_v24, %v702_v30 }
 0x286   :  { %v729_v38 = vadd.f32 %v725_v33, %v701_v27  ;;  %v731_v4 = vadd.f32 %v727_v34, %v703_v28  ;;  %v737_v39 = vadd.f32 %v735_v37, %v728_v35  ;;  %v739_v41 = vadd.f32 %v735_v37, %v730_v36 }
 0x288   :  { %v738_v40 = vadd.f32 %v735_v37, %v729_v38  ;;  %v740_v42 = vadd.f32 %v735_v37, %v731_v4 }
 0x28a   :  { %v745_v43 = vcombine.low %v737_v39, %v738_v40  ;;  %v746_v44 = vcombine.low %v739_v41, %v740_v42 }
 0x28c   :  { %v753_v45 = vrot.slane %v745_v43, %v910_v12  ;;  %v760_v23 = vrot.slane %v746_v44, %v910_v12 }
 0x28e   :  { %v761_v46 = vcombine.low %v753_v45, %v760_v23 }
 0x290   :  { %763 = vst [vmem:[#allocation2] sm:$0xff] %v761_v46 }
 0x291   :  { %824 = shalt.err (!%p821_p4)
}
 0x292   :  { %773 = dma.vmem_to_hbm [thread:$0]  %s771_s13, 128, %s1003_s9, [#allocation3]  }
 0x293   :  { %833 = dma.done.wait [#allocation3], 128  }
 0x294   :  { %834 = vsyncadd [#allocation3], 4294967168 }
 0x295   :  { %777 = vsyncpa [#allocation3], 1 }

</bundles_post_ra>
